<compile_context>
chip_gen: v7x
topology: tpu7x:2x2x1
jax: 0.10.0
libtpu: 0.0.40
codegen_flags: <defaults>
</compile_context>

<pallas_src>
import functools

import jax
import jax.numpy as jnp
from jax.experimental import pallas as pl
from jax.experimental.pallas import tpu as pltpu

_NEG_INF = -1e30  # bias for padded logit lanes (exp underflows to 0 in f32)


# ----------------------------------------------------------------------------
# Host-side helper: Hamilton block matrix with the forward()'s -A baked in.
#   T = Q @ [xr; xi; xj; xk]  reproduces exactly the Tx_0_* of the PyTorch
#   forward (which negates all four operators before propagating).
# ----------------------------------------------------------------------------
def build_hamilton_block(A_r, A_i, A_j, A_k):
    return jnp.block([
        [-A_r,  A_i,  A_j,  A_k],
        [-A_i, -A_r,  A_k, -A_j],
        [-A_j, -A_k, -A_r,  A_i],
        [-A_k,  A_j, -A_i, -A_r],
    ])  # [4N, 4N]


# ----------------------------------------------------------------------------
# Single fused kernel: two QuaNetConv layers + per-component ReLU + head
# ----------------------------------------------------------------------------
def _quanet_fused_kernel(q_ref, x_ref, w1_ref, b1_ref, w2_ref, b2_ref,
                         wc_ref, bc_ref, out_ref, *, n, hidden, prop_dtype):
    f32 = jnp.float32

    # Propagation operator (sign flips already folded in host-side); cast once.
    Q = q_ref[...].astype(prop_dtype)                        # [4N, 4N]

    # ---- QuaNetConv layer 1 -------------------------------------------------
    # One block matmul replaces 16 per-component propagations.
    t1 = jnp.dot(Q, x_ref[...].astype(prop_dtype),
                 preferred_element_type=f32)                 # [4N, F0]
    h1 = jnp.dot(t1, w1_ref[...], preferred_element_type=f32) + b1_ref[...]
    # complex_relu_layer_different == independent per-component ReLU, which is
    # exactly elementwise ReLU on the stacked [4N, H] tensor.
    h1 = jnp.maximum(h1, 0.0)                                # [4N, H]

    # ---- QuaNetConv layer 2 -------------------------------------------------
    t2 = jnp.dot(Q, h1.astype(prop_dtype), preferred_element_type=f32)
    h2 = jnp.dot(t2, w2_ref[...], preferred_element_type=f32) + b2_ref[...]
    h2 = jnp.maximum(h2, 0.0)                                # [4N, H]

    # ---- Conv1d(k=1) head ---------------------------------------------------
    # concat([hr, hi, hj, hk], -1) @ Wc  ==  sum_c  h_c @ Wc[c*H:(c+1)*H, :]
    # -> 4 block dots on sublane-aligned slices; no cross-lane concat needed.
    Wc = wc_ref[...]                                         # [4H, L_pad]
    acc = jnp.dot(h2[0:n], Wc[0:hidden], preferred_element_type=f32)
    for c in range(1, 4):
        acc = acc + jnp.dot(h2[c * n:(c + 1) * n],
                            Wc[c * hidden:(c + 1) * hidden],
                            preferred_element_type=f32)
    logits = acc + bc_ref[...]                               # [N, L_pad]

    # ---- log_softmax over lane-padded logits (padding lanes at -1e30) -------
    m = jnp.max(logits, axis=-1, keepdims=True)
    z = logits - m
    lse = jnp.log(jnp.sum(jnp.exp(z), axis=-1, keepdims=True))
    out_ref[...] = z - lse                                   # [N, L_pad]


def quanet_forward(params, Q, xr, xi, xj, xk, *, prop_dtype=jnp.float32):
    """Fused forward. Q = build_hamilton_block(A_r, A_i, A_j, A_k)."""
    n = xr.shape[0]
    hidden = params["w2"].shape[1]
    label_dim = params["w_conv"].shape[1]
    l_pad = max(128, ((label_dim + 127) // 128) * 128)

    # Stack quaternion components row-wise (tiny, stays on device).
    x_stack = jnp.concatenate([xr, xi, xj, xk], axis=0)      # [4N, F0]

    # Lane-pad the head weights; padded columns get a huge negative bias so
    # they contribute exp(...) == 0 to the softmax normalization.
    wc_pad = jnp.zeros((params["w_conv"].shape[0], l_pad), jnp.float32)
    wc_pad = wc_pad.at[:, :label_dim].set(params["w_conv"])
    bc_pad = jnp.full((1, l_pad), _NEG_INF, jnp.float32)
    bc_pad = bc_pad.at[0, :label_dim].set(params["b_conv"])

    vmem = pl.BlockSpec(memory_space=pltpu.MemorySpace.VMEM)
    out_pad = pl.pallas_call(
        functools.partial(_quanet_fused_kernel,
                          n=n, hidden=hidden, prop_dtype=prop_dtype),
        out_shape=jax.ShapeDtypeStruct((n, l_pad), jnp.float32),
        in_specs=[vmem] * 8,
        out_specs=vmem,
    )(Q, x_stack,
      params["w1"], params["b1"],
      params["w2"], params["b2"],
      wc_pad, bc_pad)

    return out_pad[:, :label_dim]                            # [N, label_dim]


# ----------------------------------------------------------------------------
# Pure-JAX reference (mirrors the PyTorch forward, per-component, f32)
# ----------------------------------------------------------------------------
def quanet_forward_ref(params, A_r, A_i, A_j, A_k, xr, xi, xj, xk):
    def layer(xr, xi, xj, xk, w, b):
        nAr, nAi, nAj, nAk = -A_r, -A_i, -A_j, -A_k
        tr = nAr @ xr - nAi @ xi - nAj @ xj - nAk @ xk
        ti = nAr @ xi + nAi @ xr + nAj @ xk - nAk @ xj
        tj = nAr @ xj - nAi @ xk + nAj @ xr + nAk @ xi
        tk = nAr @ xk + nAi @ xj - nAj @ xi + nAk @ xr
        outs = [t @ w + b for t in (tr, ti, tj, tk)]
        return [jnp.maximum(o, 0.0) for o in outs]           # per-component ReLU

    xr, xi, xj, xk = layer(xr, xi, xj, xk, params["w1"], params["b1"])
    xr, xi, xj, xk = layer(xr, xi, xj, xk, params["w2"], params["b2"])
    x_cat = jnp.concatenate([xr, xi, xj, xk], axis=-1)
    logits = x_cat @ params["w_conv"] + params["b_conv"]
    return jax.nn.log_softmax(logits, axis=1)


# ----------------------------------------------------------------------------
# Deterministic setup
# ----------------------------------------------------------------------------
def glorot(key, shape):
    fan_in, fan_out = shape[-2], shape[-1]
    lim = jnp.sqrt(6.0 / (fan_in + fan_out))
    return jax.random.uniform(key, shape, jnp.float32, -lim, lim)


def build_dense_propagation(key, n_nodes):
    """Densify the sparse `propagate(edge_index, x, norm)` operators."""
    src = jnp.concatenate([jnp.arange(n_nodes), (jnp.arange(n_nodes) + 1) % n_nodes])
    dst = jnp.concatenate([(jnp.arange(n_nodes) + 1) % n_nodes, jnp.arange(n_nodes)])
    n_edges = src.shape[0]
    keys = jax.random.split(key, 4)
    mats = []
    for k in keys:
        norm = jax.random.normal(k, (n_edges,), jnp.float32) * 0.3
        A = jnp.zeros((n_nodes, n_nodes), jnp.float32).at[src, dst].add(norm)
        mats.append(A)
    return mats  # A_real, A_imag_i, A_imag_j, A_imag_k


if __name__ == "__main__":
    N = 16            # nodes
    NUM_FEATURES = 4
    HIDDEN = 32       # 4*HIDDEN = 128 -> exactly lane-dense head
    LABEL_DIM = 2

    root = jax.random.PRNGKey(0)
    k_graph, k_w1, k_w2, k_wc, k_bc, k_xr, k_xi, k_xj, k_xk = jax.random.split(root, 9)

    A_r, A_i, A_j, A_k = build_dense_propagation(k_graph, N)
    # Built once per graph, outside jit, forward()'s sign flips folded in.
    Q = build_hamilton_block(A_r, A_i, A_j, A_k)             # [4N, 4N]

    params = {
        # QuaNetConv 1: weight [K=1, in, out] -> [in, out]; bias zeros (kept 2-D)
        "w1": glorot(k_w1, (NUM_FEATURES, HIDDEN)),
        "b1": jnp.zeros((1, HIDDEN), jnp.float32),
        # QuaNetConv 2
        "w2": glorot(k_w2, (HIDDEN, HIDDEN)),
        "b2": jnp.zeros((1, HIDDEN), jnp.float32),
        # Conv1d(4*hidden -> label_dim, k=1): weight [L, 4H, 1] stored as [4H, L]
        "w_conv": jax.random.uniform(
            k_wc, (4 * HIDDEN, LABEL_DIM), jnp.float32,
            -1.0 / jnp.sqrt(4.0 * HIDDEN), 1.0 / jnp.sqrt(4.0 * HIDDEN)),
        "b_conv": jax.random.uniform(
            k_bc, (LABEL_DIM,), jnp.float32,
            -1.0 / jnp.sqrt(4.0 * HIDDEN), 1.0 / jnp.sqrt(4.0 * HIDDEN)),
    }

    xr = jax.random.normal(k_xr, (N, NUM_FEATURES), jnp.float32)
    xi = jax.random.normal(k_xi, (N, NUM_FEATURES), jnp.float32)
    xj = jax.random.normal(k_xj, (N, NUM_FEATURES), jnp.float32)
    xk = jax.random.normal(k_xk, (N, NUM_FEATURES), jnp.float32)

    ref = quanet_forward_ref(params, A_r, A_i, A_j, A_k, xr, xi, xj, xk)

    # f32 propagation path (faithful to the reference)
    fwd_f32 = jax.jit(functools.partial(quanet_forward, prop_dtype=jnp.float32))
    out = jax.block_until_ready(fwd_f32(params, Q, xr, xi, xj, xk))
    assert out.shape == (N, LABEL_DIM), out.shape
    assert jnp.allclose(out, ref, rtol=1e-3, atol=1e-3), (out, ref)

    # bf16 propagation path (halves HBM/VMEM traffic for Q at scale;
    # f32 MXU accumulation, f32 weights and softmax).
    fwd_bf16 = jax.jit(functools.partial(quanet_forward, prop_dtype=jnp.bfloat16))
    out_bf16 = jax.block_until_ready(fwd_bf16(params, Q, xr, xi, xj, xk))
    assert out_bf16.shape == (N, LABEL_DIM), out_bf16.shape
    assert bool(jnp.all(jnp.isfinite(out_bf16)))
    assert jnp.allclose(out_bf16, ref, rtol=1e-1, atol=1e-1), (out_bf16, ref)

    print("KERNEL_OK")
</pallas_src>

<mosaic_0001>
module attributes {stable_mosaic.version = 11 : i64} {
  func.func @_quanet_fused_kernel(%arg0: memref<64x64xf32, #tpu.memory_space<vmem>>, %arg1: memref<64x4xf32, #tpu.memory_space<vmem>>, %arg2: memref<4x32xf32, #tpu.memory_space<vmem>>, %arg3: memref<1x32xf32, #tpu.memory_space<vmem>>, %arg4: memref<32x32xf32, #tpu.memory_space<vmem>>, %arg5: memref<1x32xf32, #tpu.memory_space<vmem>>, %arg6: memref<128x128xf32, #tpu.memory_space<vmem>>, %arg7: memref<1x128xf32, #tpu.memory_space<vmem>>, %arg8: memref<16x128xf32, #tpu.memory_space<vmem>>) attributes {dimension_semantics = [], scalar_prefetch = 0 : i64, scratch_operands = 0 : i64, tpu.core_type = #tpu.core_type<tc>} {
    %c0 = arith.constant 0 : index
    %c0_0 = arith.constant 0 : index
    %0 = vector.load %arg0[%c0, %c0_0] : memref<64x64xf32, #tpu.memory_space<vmem>>, vector<64x64xf32>
    %c0_1 = arith.constant 0 : index
    %c0_2 = arith.constant 0 : index
    %1 = vector.load %arg1[%c0_1, %c0_2] : memref<64x4xf32, #tpu.memory_space<vmem>>, vector<64x4xf32>
    %cst = arith.constant dense<0.000000e+00> : vector<64x4xf32>
    %2 = tpu.matmul %0, %1, %cst {dimension_numbers = #tpu.dot_dimension_numbers<[1], [0], [0], [1], [0, 0, 1, 1], [], []>} : vector<64x64xf32>, vector<64x4xf32>, vector<64x4xf32> -> vector<64x4xf32>
    %c0_3 = arith.constant 0 : index
    %c0_4 = arith.constant 0 : index
    %3 = vector.load %arg2[%c0_3, %c0_4] : memref<4x32xf32, #tpu.memory_space<vmem>>, vector<4x32xf32>
    %cst_5 = arith.constant dense<0.000000e+00> : vector<64x32xf32>
    %4 = tpu.matmul %2, %3, %cst_5 {dimension_numbers = #tpu.dot_dimension_numbers<[1], [0], [0], [1], [0, 0, 1, 1], [], []>} : vector<64x4xf32>, vector<4x32xf32>, vector<64x32xf32> -> vector<64x32xf32>
    %c0_6 = arith.constant 0 : index
    %c0_7 = arith.constant 0 : index
    %5 = vector.load %arg3[%c0_6, %c0_7] : memref<1x32xf32, #tpu.memory_space<vmem>>, vector<1x32xf32>
    %6 = vector.broadcast %5 : vector<1x32xf32> to vector<64x32xf32>
    %7 = arith.addf %4, %6 : vector<64x32xf32>
    %cst_8 = arith.constant 0.000000e+00 : f32
    %8 = vector.broadcast %cst_8 : f32 to vector<64x32xf32>
    %9 = arith.maximumf %7, %8 : vector<64x32xf32>
    %cst_9 = arith.constant dense<0.000000e+00> : vector<64x32xf32>
    %10 = tpu.matmul %0, %9, %cst_9 {dimension_numbers = #tpu.dot_dimension_numbers<[1], [0], [0], [1], [0, 0, 1, 1], [], []>} : vector<64x64xf32>, vector<64x32xf32>, vector<64x32xf32> -> vector<64x32xf32>
    %c0_10 = arith.constant 0 : index
    %c0_11 = arith.constant 0 : index
    %11 = vector.load %arg4[%c0_10, %c0_11] : memref<32x32xf32, #tpu.memory_space<vmem>>, vector<32x32xf32>
    %cst_12 = arith.constant dense<0.000000e+00> : vector<64x32xf32>
    %12 = tpu.matmul %10, %11, %cst_12 {dimension_numbers = #tpu.dot_dimension_numbers<[1], [0], [0], [1], [0, 0, 1, 1], [], []>} : vector<64x32xf32>, vector<32x32xf32>, vector<64x32xf32> -> vector<64x32xf32>
    %c0_13 = arith.constant 0 : index
    %c0_14 = arith.constant 0 : index
    %13 = vector.load %arg5[%c0_13, %c0_14] : memref<1x32xf32, #tpu.memory_space<vmem>>, vector<1x32xf32>
    %14 = vector.broadcast %13 : vector<1x32xf32> to vector<64x32xf32>
    %15 = arith.addf %12, %14 : vector<64x32xf32>
    %cst_15 = arith.constant 0.000000e+00 : f32
    %16 = vector.broadcast %cst_15 : f32 to vector<64x32xf32>
    %17 = arith.maximumf %15, %16 : vector<64x32xf32>
    %c0_16 = arith.constant 0 : index
    %c0_17 = arith.constant 0 : index
    %18 = vector.load %arg6[%c0_16, %c0_17] : memref<128x128xf32, #tpu.memory_space<vmem>>, vector<128x128xf32>
    %19 = vector.extract_strided_slice %17 {offsets = [0, 0], sizes = [16, 32], strides = [1, 1]} : vector<64x32xf32> to vector<16x32xf32>
    %20 = vector.extract_strided_slice %18 {offsets = [0, 0], sizes = [32, 128], strides = [1, 1]} : vector<128x128xf32> to vector<32x128xf32>
    %cst_18 = arith.constant dense<0.000000e+00> : vector<16x128xf32>
    %21 = tpu.matmul %19, %20, %cst_18 {dimension_numbers = #tpu.dot_dimension_numbers<[1], [0], [0], [1], [0, 0, 1, 1], [], []>} : vector<16x32xf32>, vector<32x128xf32>, vector<16x128xf32> -> vector<16x128xf32>
    %22 = vector.extract_strided_slice %17 {offsets = [16, 0], sizes = [16, 32], strides = [1, 1]} : vector<64x32xf32> to vector<16x32xf32>
    %23 = vector.extract_strided_slice %18 {offsets = [32, 0], sizes = [32, 128], strides = [1, 1]} : vector<128x128xf32> to vector<32x128xf32>
    %cst_19 = arith.constant dense<0.000000e+00> : vector<16x128xf32>
    %24 = tpu.matmul %22, %23, %cst_19 {dimension_numbers = #tpu.dot_dimension_numbers<[1], [0], [0], [1], [0, 0, 1, 1], [], []>} : vector<16x32xf32>, vector<32x128xf32>, vector<16x128xf32> -> vector<16x128xf32>
    %25 = arith.addf %21, %24 : vector<16x128xf32>
    %26 = vector.extract_strided_slice %17 {offsets = [32, 0], sizes = [16, 32], strides = [1, 1]} : vector<64x32xf32> to vector<16x32xf32>
    %27 = vector.extract_strided_slice %18 {offsets = [64, 0], sizes = [32, 128], strides = [1, 1]} : vector<128x128xf32> to vector<32x128xf32>
    %cst_20 = arith.constant dense<0.000000e+00> : vector<16x128xf32>
    %28 = tpu.matmul %26, %27, %cst_20 {dimension_numbers = #tpu.dot_dimension_numbers<[1], [0], [0], [1], [0, 0, 1, 1], [], []>} : vector<16x32xf32>, vector<32x128xf32>, vector<16x128xf32> -> vector<16x128xf32>
    %29 = arith.addf %25, %28 : vector<16x128xf32>
    %30 = vector.extract_strided_slice %17 {offsets = [48, 0], sizes = [16, 32], strides = [1, 1]} : vector<64x32xf32> to vector<16x32xf32>
    %31 = vector.extract_strided_slice %18 {offsets = [96, 0], sizes = [32, 128], strides = [1, 1]} : vector<128x128xf32> to vector<32x128xf32>
    %cst_21 = arith.constant dense<0.000000e+00> : vector<16x128xf32>
    %32 = tpu.matmul %30, %31, %cst_21 {dimension_numbers = #tpu.dot_dimension_numbers<[1], [0], [0], [1], [0, 0, 1, 1], [], []>} : vector<16x32xf32>, vector<32x128xf32>, vector<16x128xf32> -> vector<16x128xf32>
    %33 = arith.addf %29, %32 : vector<16x128xf32>
    %c0_22 = arith.constant 0 : index
    %c0_23 = arith.constant 0 : index
    %34 = vector.load %arg7[%c0_22, %c0_23] : memref<1x128xf32, #tpu.memory_space<vmem>>, vector<1x128xf32>
    %35 = vector.broadcast %34 : vector<1x128xf32> to vector<16x128xf32>
    %36 = arith.addf %33, %35 : vector<16x128xf32>
    %cst_24 = arith.constant dense<0xFF800000> : vector<16xf32>
    %37 = vector.multi_reduction <maximumf>, %36, %cst_24 [1] : vector<16x128xf32> to vector<16xf32>
    %38 = vector.shape_cast %37 : vector<16xf32> to vector<16x1xf32>
    %39 = vector.broadcast %38 : vector<16x1xf32> to vector<16x128xf32>
    %40 = arith.subf %36, %39 : vector<16x128xf32>
    %41 = math.exp %40 : vector<16x128xf32>
    %cst_25 = arith.constant dense<0.000000e+00> : vector<16xf32>
    %42 = vector.multi_reduction <add>, %41, %cst_25 [1] : vector<16x128xf32> to vector<16xf32>
    %43 = vector.shape_cast %42 : vector<16xf32> to vector<16x1xf32>
    %44 = math.log %43 : vector<16x1xf32>
    %45 = vector.broadcast %44 : vector<16x1xf32> to vector<16x128xf32>
    %46 = arith.subf %40, %45 : vector<16x128xf32>
    %c0_26 = arith.constant 0 : index
    %c0_27 = arith.constant 0 : index
    %47 = vector.load %arg8[%c0_26, %c0_27] : memref<16x128xf32, #tpu.memory_space<vmem>>, vector<16x128xf32>
    tpu.vector_store %arg8[%c0_26, %c0_27], %46 {strides = array<i32>} : memref<16x128xf32, #tpu.memory_space<vmem>>, vector<16x128xf32>,
    return
  }
}

</mosaic_0001>

<bundles_post_ra>
// kernel: quanet_forward.1
= control target key start
LH: loop header
LB: loop body
LE: loop exit
PB: predicated region body
PF: predicated region fallthrough
CT: control target
= control target key end

     0   :  { %vm45_vm0 = vcmask 523264   ;;  %vm208_vm1 = vcmask 1043456   ;;  %vm183_vm2 = vcmask 31744   ;;  %vm441_vm3 = vcmask 261120   ;;  %s1538_s1 = inlined_call_operand.vmem [shape: f32[64,4], index: 1, kind: input, shape index: {}]   ;;  %s1539_s0 = inlined_call_operand.vmem [shape: f32[64,64], index: 0, kind: input, shape index: {}]   ;;  %s1540_s2 = inlined_call_operand.vmem [shape: f32[4,32], index: 2, kind: input, shape index: {}]   ;;  %s1541_s4 = inlined_call_operand.vmem [shape: f32[32,32], index: 4, kind: input, shape index: {}]   ;;  %s1542_s3 = inlined_call_operand.vmem [shape: f32[1,32], index: 3, kind: input, shape index: {}]   ;;  %s1543_s6 = inlined_call_operand.vmem [shape: f32[128,128], index: 6, kind: input, shape index: {}]   ;;  %s1544_s5 = inlined_call_operand.vmem [shape: f32[1,32], index: 5, kind: input, shape index: {}]   ;;  %s1545_s7 = inlined_call_operand.vmem [shape: f32[1,128], index: 7, kind: input, shape index: {}]   ;;  %s1546_s8 = inlined_call_operand.vmem [shape: f32[16,128], index: 8, kind: output, shape index: {}]  }
   0x1   :  { %v37_v0 = vld [vmem:[%s1538_s1] sm:$0xff]  ;;  %v38_v1 = vld [vmem:[%s1538_s1 + $0x8] sm:$0xff]  ;;  %v39_v2 = vld [vmem:[%s1538_s1 + $0x10] sm:$0xff] }
   0x2   :  { %v1213_v3 = vpack.c.bf16 %v38_v1, %v37_v0  ;;  %v40_v4 = vld [vmem:[%s1538_s1 + $0x18] sm:$0xff]  ;;  %v41_v6 = vld [vmem:[%s1538_s1 + $0x20] sm:$0xff]  ;;  %v42_v7 = vld [vmem:[%s1538_s1 + $0x28] sm:$0xff] }
   0x3   :  { %v1217_v5 = vpack.c.bf16 %v40_v4, %v39_v2  ;;  %v29_v8 = vld [vmem:[%s1539_s0] sm:$0xff]  ;;  %v1221_v9 = vpack.c.bf16 %v42_v7, %v41_v6  ;;  %v43_v10 = vld [vmem:[%s1538_s1 + $0x30] sm:$0xff]  ;;  %v44_v11 = vld [vmem:[%s1538_s1 + $0x38] sm:$0xff] }
   0x4   :  { %1214 = vmatprep.subr.bf16.mxu0 %v1213_v3  ;;  %1095 = vmatprep.mubr.msk.f32.mxu0 %vm45_vm0, %v29_v8  ;;  %v1225_v12 = vpack.c.bf16 %v44_v11, %v43_v10  ;;  %v1375_v13 = vld [vmem:[%s1539_s0 + $0x8] sm:$0xff]  ;;  %v1380_v14 = vld [vmem:[%s1539_s0 + $0x10] sm:$0xff]  ;;  %v1389_v15 = vld [vmem:[%s1539_s0 + $0x18] sm:$0xff] }
   0x5   :  { %1216 = vmatpush3.bf16.msra.mxu0 %v1213_v3  ;;  %v1394_v16 = vld [vmem:[%s1539_s0 + $0x20] sm:$0xff]  ;;  %v1403_v17 = vld [vmem:[%s1539_s0 + $0x28] sm:$0xff]  ;;  %v1408_v18 = vld [vmem:[%s1539_s0 + $0x30] sm:$0xff] }
   0x6   :  { %1218 = vmatprep.subr.bf16.mxu0 %v1217_v5  ;;  %v1417_v19 = vld [vmem:[%s1539_s0 + $0x38] sm:$0xff]  ;;  %v175_v20 = vld [vmem:[%s1540_s2] sm:$0xf]  ;;  %v431_v30 = vld [vmem:[%s1541_s4 + $0x8] sm:$0xff] }
   0x7   :  { %1107 = vmatprep.subr.msk.mxu1 %vm208_vm1, %v175_v20  ;;  %v430_v29 = vld [vmem:[%s1541_s4] sm:$0xff]  ;;  %v432_v31 = vld [vmem:[%s1541_s4 + $0x10] sm:$0xff]  ;;  %v433_v33 = vld [vmem:[%s1541_s4 + $0x18] sm:$0xff] }
   0x8   :  { %1108 = vmatpush3.msk.msra.mxu1 %vm208_vm1, %v175_v20  ;;  %v1245_v32 = vpack.c.bf16 %v431_v30, %v430_v29  ;;  %v1249_v34 = vpack.c.bf16 %v433_v33, %v432_v31  ;;  %v966_v35 = vld [vmem:[%s1542_s3] ss:$0 sm:$0xff]  ;;  %v580_v1 = vld [vmem:[%s1543_s6 + $0x8] sm:$0xff]  ;;  %v581_v2 = vld [vmem:[%s1543_s6 + $0x10] sm:$0xff] }
   0x9   :  { %1220 = vmatpush3.bf16.msra.mxu0 %v1217_v5  ;;  %v579_v0 = vld [vmem:[%s1543_s6] sm:$0xff]  ;;  %v582_v4 = vld [vmem:[%s1543_s6 + $0x18] sm:$0xff] }
   0xa   :  { %1222 = vmatprep.subr.bf16.mxu0 %v1221_v9  ;;  %v1261_v3 = vpack.c.bf16 %v580_v1, %v579_v0  ;;  %v1265_v5 = vpack.c.bf16 %v582_v4, %v581_v2  ;;  %v590_v29 = vld [vmem:[%s1543_s6 + $0x58] sm:$0xff] }
   0xd   :  { %1224 = vmatpush3.bf16.msra.mxu0 %v1221_v9 }
   0xe   :  { %1226 = vmatprep.subr.bf16.mxu0 %v1225_v12 }
  0x11   :  { %1228 = vmatpush3.bf16.msra.mxu0 %v1225_v12 }
  0x12   :  { %1246 = vmatprep.subr.bf16.mxu0 %v1245_v32 }
  0x14   :  { %1096 = vmatmul.mubr.msk.f32.vlgmr.msra.gmra.mrb[0].mxu0 %vm45_vm0, %v1375_v13 }
  0x15   :  { %1098 = vmatprep.mubr.msk.f32.mxu0 %vm45_vm0, %v1380_v14  ;;  %1248 = vmatpush3.bf16.msra.mxu0 %v1245_v32 }
  0x16   :  { %1250 = vmatprep.subr.bf16.mxu0 %v1249_v34 }
  0x18   :  { %1099 = vmatmul.mubr.msk.f32.gmra.mrb[2].mxu0 %vm45_vm0, %v1389_v15 }
  0x19   :  { %1101 = vmatprep.mubr.msk.f32.mxu0 %vm45_vm0, %v1394_v16  ;;  %1252 = vmatpush3.bf16.msra.mxu0 %v1249_v34 }
  0x1c   :  { %1102 = vmatmul.mubr.msk.f32.gmra.mrb[4].mxu0 %vm45_vm0, %v1403_v17 }
  0x1d   :  { %1104 = vmatprep.mubr.msk.f32.mxu0 %vm45_vm0, %v1408_v18 }
  0x20   :  { %1105 = vmatmul.mubr.msk.f32.gmra.mrb[6].mxu0 %vm45_vm0, %v1417_v19 }
  0xe7   :  { %v1097_v21 = vpop.f32.mrb[0].mxu0 }
  0xe8   :  { %v136_v22 = vpop.f32.mrb[1].mxu0 }
  0xe9   :  { %1109 = vmatprep.mubr.msk.f32.mxu1 %vm183_vm2, %v136_v22 }
  0xea   :  { %1110 = vmatmul.mubr.msk.f32.vlgmr.msra.gmra.mrb[0].mxu1 %vm183_vm2, %v1097_v21  ;;  %v588_v21 = vld [vmem:[%s1543_s6 + $0x48] sm:$0xff] }
  0xeb   :  { %v1100_v23 = vpop.f32.mrb[2].mxu0 }
  0xec   :  { %v146_v24 = vpop.f32.mrb[3].mxu0 }
  0xed   :  { %1112 = vmatprep.mubr.msk.f32.mxu1 %vm183_vm2, %v146_v24 }
  0xee   :  { %1113 = vmatmul.mubr.msk.f32.gmra.mrb[2].mxu1 %vm183_vm2, %v1100_v23  ;;  %v984_v23 = vld [vmem:[%s1544_s5] ss:$0 sm:$0xff] }
  0xef   :  { %v1103_v25 = vpop.f32.mrb[4].mxu0 }
  0xf0   :  { %v156_v26 = vpop.f32.mrb[5].mxu0 }
  0xf1   :  { %1115 = vmatprep.mubr.msk.f32.mxu1 %vm183_vm2, %v156_v26 }
  0xf2   :  { %1116 = vmatmul.mubr.msk.f32.gmra.mrb[4].mxu1 %vm183_vm2, %v1103_v25 }
  0xf3   :  { %v1106_v27 = vpop.f32.mrb[6].mxu0 }
  0xf4   :  { %v166_v28 = vpop.f32.mrb[7].mxu0 }
  0xf5   :  { %1118 = vmatprep.mubr.msk.f32.mxu1 %vm183_vm2, %v166_v28  ;;  %v589_v28 = vld [vmem:[%s1543_s6 + $0x50] sm:$0xff] }
  0xf6   :  { %1119 = vmatmul.mubr.msk.f32.gmra.mrb[6].mxu1 %vm183_vm2, %v1106_v27 }
  0xf7   :  { %1137 = vmatprep.mubr.msk.f32.mxu1 %vm45_vm0, %v29_v8 }
 0x1bd   :  { %v1111_v36 = vpop.f32.mrb[0].mxu1 }
 0x1be   :  { %v284_v37 = vadd.f32 %v1111_v36, %v966_v35  ;;  %v278_v38 = vpop.f32.mrb[1].mxu1 }
 0x1bf   :  { %v279_v39 = vadd.f32 %v966_v35, %v278_v38  ;;  %v592_v38 = vld [vmem:[%s1543_s6 + $0x68] sm:$0xff] }
 0x1c0   :  { %v318_v40 = vmax.f32 %v284_v37, 0.0  ;;  %v591_v37 = vld [vmem:[%s1543_s6 + $0x60] sm:$0xff] }
 0x1c1   :  { %v317_v41 = vmax.f32 %v279_v39, 0.0  ;;  %v1114_v42 = vpop.f32.mrb[2].mxu1 }
 0x1c2   :  { %v294_v43 = vadd.f32 %v1114_v42, %v966_v35  ;;  %v288_v44 = vpop.f32.mrb[3].mxu1 }
 0x1c3   :  { %v1229_v45 = vpack.c.bf16 %v318_v40, %v317_v41  ;;  %v289_v46 = vadd.f32 %v966_v35, %v288_v44  ;;  %v1277_v44 = vpack.c.bf16 %v592_v38, %v591_v37 }
 0x1c4   :  { %v320_v47 = vmax.f32 %v294_v43, 0.0 }
 0x1c5   :  { %v319_v48 = vmax.f32 %v289_v46, 0.0  ;;  %v1117_v49 = vpop.f32.mrb[4].mxu1  ;;  %1230 = vmatprep.subr.bf16.mxu1 %v1229_v45  ;;  %v593_v46 = vld [vmem:[%s1543_s6 + $0x70] sm:$0xff] }
 0x1c6   :  { %v304_v50 = vadd.f32 %v1117_v49, %v966_v35  ;;  %v298_v51 = vpop.f32.mrb[5].mxu1  ;;  %1232 = vmatpush3.bf16.msra.mxu1 %v1229_v45 }
 0x1c7   :  { %v1233_v52 = vpack.c.bf16 %v320_v47, %v319_v48  ;;  %v299_v53 = vadd.f32 %v966_v35, %v298_v51  ;;  %v594_v47 = vld [vmem:[%s1543_s6 + $0x78] sm:$0xff] }
 0x1c8   :  { %v322_v54 = vmax.f32 %v304_v50, 0.0 }
 0x1c9   :  { %v321_v55 = vmax.f32 %v299_v53, 0.0  ;;  %v1120_v56 = vpop.f32.mrb[6].mxu1  ;;  %1234 = vmatprep.subr.bf16.mxu1 %v1233_v52 }
 0x1ca   :  { %v314_v57 = vadd.f32 %v1120_v56, %v966_v35  ;;  %v308_v58 = vpop.f32.mrb[7].mxu1  ;;  %1236 = vmatpush3.bf16.msra.mxu1 %v1233_v52  ;;  %v1281_v52 = vpack.c.bf16 %v594_v47, %v593_v46 }
 0x1cb   :  { %v1237_v59 = vpack.c.bf16 %v322_v54, %v321_v55  ;;  %v309_v60 = vadd.f32 %v966_v35, %v308_v58  ;;  %v1273_v35 = vpack.c.bf16 %v590_v29, %v589_v28 }
 0x1cc   :  { %v324_v61 = vmax.f32 %v314_v57, 0.0 }
 0x1cd   :  { %v323_v62 = vmax.f32 %v309_v60, 0.0  ;;  %1238 = vmatprep.subr.bf16.mxu1 %v1237_v59 }
 0x1ce   :  { %1240 = vmatpush3.bf16.msra.mxu1 %v1237_v59 }
 0x1cf   :  { %v1241_v63 = vpack.c.bf16 %v324_v61, %v323_v62  ;;  %v1001_v62 = vld [vmem:[%s1545_s7] ss:$0 sm:$0xff] }
 0x1d1   :  { %1242 = vmatprep.subr.bf16.mxu1 %v1241_v63 }
 0x1d2   :  { %1244 = vmatpush3.bf16.msra.mxu1 %v1241_v63 }
 0x1d3   :  { %1262 = vmatprep.subr.bf16.mxu1 %v1261_v3 }
 0x1d5   :  { %1138 = vmatmul.mubr.msk.f32.vlgmr.msra.gmra.mrb[8].mxu1 %vm45_vm0, %v1375_v13 }
 0x1d6   :  { %1140 = vmatprep.mubr.msk.f32.mxu1 %vm45_vm0, %v1380_v14  ;;  %1264 = vmatpush3.bf16.msra.mxu1 %v1261_v3  ;;  %v583_v14 = vld [vmem:[%s1543_s6 + $0x20] sm:$0xff] }
 0x1d7   :  { %1266 = vmatprep.subr.bf16.mxu1 %v1265_v5 }
 0x1d9   :  { %1141 = vmatmul.mubr.msk.f32.gmra.mrb[10].mxu1 %vm45_vm0, %v1389_v15  ;;  %v584_v15 = vld [vmem:[%s1543_s6 + $0x28] sm:$0xff] }
 0x1da   :  { %1143 = vmatprep.mubr.msk.f32.mxu1 %vm45_vm0, %v1394_v16  ;;  %1268 = vmatpush3.bf16.msra.mxu1 %v1265_v5  ;;  %v1253_v16 = vpack.c.bf16 %v584_v15, %v583_v14 }
 0x1dc   :  { %1254 = vmatprep.subr.bf16.mxu0 %v1253_v16 }
 0x1dd   :  { %1144 = vmatmul.mubr.msk.f32.gmra.mrb[12].mxu1 %vm45_vm0, %v1403_v17  ;;  %v585_v17 = vld [vmem:[%s1543_s6 + $0x30] sm:$0xff] }
 0x1de   :  { %1146 = vmatprep.mubr.msk.f32.mxu1 %vm45_vm0, %v1408_v18  ;;  %v586_v18 = vld [vmem:[%s1543_s6 + $0x38] sm:$0xff] }
 0x1df   :  { %v1257_v20 = vpack.c.bf16 %v586_v18, %v585_v17 }
 0x1e1   :  { %1147 = vmatmul.mubr.msk.f32.gmra.mrb[14].mxu1 %vm45_vm0, %v1417_v19  ;;  %v587_v19 = vld [vmem:[%s1543_s6 + $0x40] sm:$0xff] }
 0x1e2   :  { %v1269_v22 = vpack.c.bf16 %v588_v21, %v587_v19 }
 0x1e4   :  { %1270 = vmatprep.subr.bf16.mxu1 %v1269_v22 }
 0x2a8   :  { %v1139_v6 = vpop.f32.mrb[8].mxu1 }
 0x2a9   :  { %v391_v7 = vpop.f32.mrb[9].mxu1 }
 0x2aa   :  { %1157 = vmatprep.mubr.msk.f32.mxu0 %vm441_vm3, %v391_v7 }
 0x2ab   :  { %1158 = vmatmul.mubr.msk.f32.vlgmr.msra.gmra.mrb[8].mxu0 %vm441_vm3, %v1139_v6 }
 0x2ac   :  { %v1142_v8 = vpop.f32.mrb[10].mxu1  ;;  %1256 = vmatpush3.bf16.msra.mxu0 %v1253_v16 }
 0x2ad   :  { %v401_v9 = vpop.f32.mrb[11].mxu1  ;;  %1258 = vmatprep.subr.bf16.mxu0 %v1257_v20 }
 0x2ae   :  { %1160 = vmatprep.mubr.msk.f32.mxu0 %vm441_vm3, %v401_v9 }
 0x2af   :  { %1161 = vmatmul.mubr.msk.f32.gmra.mrb[10].mxu0 %vm441_vm3, %v1142_v8 }
 0x2b0   :  { %v1145_v10 = vpop.f32.mrb[12].mxu1  ;;  %1260 = vmatpush3.bf16.msra.mxu0 %v1257_v20 }
 0x2b1   :  { %v411_v11 = vpop.f32.mrb[13].mxu1 }
 0x2b2   :  { %1163 = vmatprep.mubr.msk.f32.mxu0 %vm441_vm3, %v411_v11 }
 0x2b3   :  { %1164 = vmatmul.mubr.msk.f32.gmra.mrb[12].mxu0 %vm441_vm3, %v1145_v10 }
 0x2b4   :  { %v1148_v12 = vpop.f32.mrb[14].mxu1 }
 0x2b5   :  { %v421_v13 = vpop.f32.mrb[15].mxu1 }
 0x2b6   :  { %1166 = vmatprep.mubr.msk.f32.mxu0 %vm441_vm3, %v421_v13 }
 0x2b7   :  { %1167 = vmatmul.mubr.msk.f32.gmra.mrb[14].mxu0 %vm441_vm3, %v1148_v12 }
 0x37e   :  { %v1159_v24 = vpop.f32.mrb[8].mxu0 }
 0x37f   :  { %v538_v25 = vadd.f32 %v1159_v24, %v984_v23  ;;  %v532_v26 = vpop.f32.mrb[9].mxu0 }
 0x380   :  { %v533_v27 = vadd.f32 %v984_v23, %v532_v26 }
 0x381   :  { %v572_v32 = vmax.f32 %v538_v25, 0.0 }
 0x382   :  { %v571_v30 = vmax.f32 %v533_v27, 0.0  ;;  %v1162_v31 = vpop.f32.mrb[10].mxu0 }
 0x383   :  { %v548_v33 = vadd.f32 %v1162_v31, %v984_v23  ;;  %v542_v34 = vpop.f32.mrb[11].mxu0 }
 0x384   :  { %v543_v36 = vadd.f32 %v984_v23, %v542_v34  ;;  %1188 = vmatprep.mubr.msk.f32.mxu1 %vm441_vm3, %v571_v30 }
 0x385   :  { %1189 = vmatmul.mubr.msk.f32.vlgmr.msra.gmra.mrb[16].mxu1 %vm441_vm3, %v572_v32  ;;  %v574_v41 = vmax.f32 %v548_v33, 0.0 }
 0x386   :  { %v573_v39 = vmax.f32 %v543_v36, 0.0  ;;  %v1165_v40 = vpop.f32.mrb[12].mxu0  ;;  %1272 = vmatpush3.bf16.msra.mxu1 %v1269_v22 }
 0x387   :  { %v558_v42 = vadd.f32 %v1165_v40, %v984_v23  ;;  %v552_v43 = vpop.f32.mrb[13].mxu0  ;;  %1274 = vmatprep.subr.bf16.mxu1 %v1273_v35 }
 0x388   :  { %v553_v45 = vadd.f32 %v984_v23, %v552_v43  ;;  %1177 = vmatprep.mubr.msk.f32.mxu0 %vm441_vm3, %v573_v39 }
 0x389   :  { %1178 = vmatmul.mubr.msk.f32.vlgmr.msra.gmra.mrb[16].mxu0 %vm441_vm3, %v574_v41  ;;  %v576_v50 = vmax.f32 %v558_v42, 0.0 }
 0x38a   :  { %v575_v48 = vmax.f32 %v553_v45, 0.0  ;;  %1276 = vmatpush3.bf16.msra.mxu1 %v1273_v35  ;;  %v1168_v49 = vpop.f32.mrb[14].mxu0 }
 0x38b   :  { %v562_v51 = vpop.f32.mrb[15].mxu0  ;;  %1278 = vmatprep.subr.bf16.mxu1 %v1277_v44  ;;  %v568_v55 = vadd.f32 %v1168_v49, %v984_v23 }
 0x38c   :  { %1199 = vmatprep.mubr.msk.f32.mxu1 %vm441_vm3, %v575_v48  ;;  %v563_v53 = vadd.f32 %v984_v23, %v562_v51 }
 0x38d   :  { %1200 = vmatmul.mubr.msk.f32.vlgmr.msra.gmra.mrb[16].mxu1 %vm441_vm3, %v576_v50  ;;  %v578_v56 = vmax.f32 %v568_v55, 0.0 }
 0x38e   :  { %v577_v54 = vmax.f32 %v563_v53, 0.0  ;;  %1280 = vmatpush3.bf16.msra.mxu1 %v1277_v44 }
 0x38f   :  { %1282 = vmatprep.subr.bf16.mxu1 %v1281_v52 }
 0x390   :  { %1210 = vmatprep.mubr.msk.f32.mxu1 %vm441_vm3, %v577_v54 }
 0x392   :  { %1284 = vmatpush3.bf16.msra.mxu1 %v1281_v52 }
 0x395   :  { %1211 = vmatmul.mubr.msk.f32.vlgmr.msra.gmra.mrb[16].mxu1 %vm441_vm3, %v578_v56 }
 0x45c   :  { %v1179_v57 = vpop.f32.mrb[16].mxu0 }
 0x45d   :  { %v667_v58 = vpop.f32.mrb[17].mxu0 }
 0x468   :  { %v1212_v59 = vpop.f32.mrb[16].mxu1 }
 0x469   :  { %v1285_v60 = vadd.f32 %v1212_v59, %v1179_v57  ;;  %v912_v61 = vpop.f32.mrb[17].mxu1 }
 0x46a   :  { %v1286_v63 = vadd.f32 %v912_v61, %v667_v58 }
 0x46b   :  { %v931_v1 = vadd.f32 %v1285_v60, %v1001_v62 }
 0x46c   :  { %v930_v0 = vadd.f32 %v1286_v63, %v1001_v62 }
 0x46e   :  { %932 = vmax.xlane.f32.xlu0 %v930_v0 }
 0x472   :  { %934 = vmax.xlane.f32.xlu0 %v931_v1 }
 0x4fb   :  { %v933_v2 = vpop.xlane.xlu0 %932 }
 0x4fc   :  { %v936_v3 = vsub.f32 %v930_v0, %v933_v2 }
 0x4fe   :  { %v938_v4 = vmul.f32 1.442695, %v936_v3 }
 0x4ff   :  { %v935_v5 = vpop.xlane.xlu0 %934 }
 0x500   :  { %v937_v6 = vsub.f32 %v931_v1, %v935_v5  ;;  %1291 = vpow2.f32 %v938_v4 }
 0x502   :  { %v940_v7 = vmul.f32 1.442695, %v937_v6 }
 0x504   :  { %1293 = vpow2.f32 %v940_v7 }
 0x50a   :  { %v1292_v8 = vpop.eup %1291 }
 0x50b   :  { %942 = vadd.xlane.f32.xlu1 %v1292_v8 }
 0x50e   :  { %v1294_v9 = vpop.eup %1293 }
 0x50f   :  { %944 = vadd.xlane.f32.xlu1 %v1294_v9 }
 0x598   :  { %v943_v10 = vpop.xlane.xlu1 %942 }
 0x599   :  { %1295 = vlog2.f32 %v943_v10 }
 0x59c   :  { %v945_v11 = vpop.xlane.xlu1 %944 }
 0x59d   :  { %1297 = vlog2.f32 %v945_v11 }
 0x5a3   :  { %v1296_v12 = vpop.eup %1295 }
 0x5a4   :  { %v947_v13 = vmul.f32 0.6931472, %v1296_v12 }
 0x5a6   :  { %v950_v14 = vsub.f32 %v936_v3, %v947_v13 }
 0x5a7   :  { %v1298_v15 = vpop.eup %1297 }
 0x5a8   :  { %952 = vst [vmem:[%s1546_s8] sm:$0xff] %v950_v14  ;;  %v949_v16 = vmul.f32 0.6931472, %v1298_v15 }
 0x5aa   :  { %v951_v17 = vsub.f32 %v937_v6, %v949_v16 }
 0x5ac   :  { %953 = vst [vmem:[%s1546_s8 + $0x8] sm:$0xff] %v951_v17 }

</bundles_post_ra>
